<compile_context>
chip_gen: v5e
topology: v5e:2x2
jax: 0.10.0
libtpu: 0.0.40
codegen_flags: <defaults>
</compile_context>

<pallas_src>
import functools

import jax
import jax.numpy as jnp
from jax.experimental import pallas as pl
from jax.experimental.pallas import tpu as pltpu


def _cloned_readout_kernel(x_ref, w_ref, ab_ref, o_ref, acc_ref, *, compute_dtype):
    k = pl.program_id(1)

    @pl.when(k == 0)
    def _init():
        acc_ref[...] = jnp.zeros_like(acc_ref)

    # In-kernel cast of the activation tile to the MXU dtype; f32 accumulation.
    x = x_ref[...].astype(compute_dtype)
    acc_ref[...] += jnp.dot(x, w_ref[...], preferred_element_type=jnp.float32)

    @pl.when(k == pl.num_programs(1) - 1)
    def _finalize():
        ab = ab_ref[...]                 # (2, N) f32: row 0 = alpha, row 1 = bias*alpha+beta
        alpha = ab[0:1, :]
        b_eff = ab[1:2, :]
        o_ref[...] = (acc_ref[...] * alpha + b_eff).astype(o_ref.dtype)


def _pick_k_tiling(D, tk_max):
    """Return (tk, D_pad): lane-aligned reduction tile and (possibly padded) D."""
    if D <= tk_max:
        return D, D
    # Prefer a lane-aligned (multiple of 128) divisor of D -> no padding needed.
    for tk in range(tk_max - tk_max % 128, 127, -128):
        if D % tk == 0:
            return tk, D
    # Fall back to zero-padding the reduction dim (zeros contribute nothing to the dot).
    tk = tk_max - tk_max % 128
    return tk, ((D + tk - 1) // tk) * tk


def cloned_readout_pallas(x_nchw, features, bias, alpha, beta, *,
                          tb=256, tk_max=2048, compute_dtype=jnp.bfloat16):
    """Pallas path. x: (B, C, H, W) or (B, D); features: (D, N); bias/alpha/beta: (N,)."""
    B = x_nchw.shape[0]
    D, N = features.shape

    # Flatten only — NO dtype copy of x here; the cast happens inside the kernel.
    x2d = x_nchw.reshape(B, D)
    # Parameter: cast once (in a real model this happens at parameter-load time).
    w = features.astype(compute_dtype)

    # Fold the source bias into the cloned affine: (s+bias)*alpha+beta = s*alpha + b_eff.
    alpha_f = alpha.astype(jnp.float32).reshape(1, N)
    b_eff = (bias.astype(jnp.float32).reshape(1, N) * alpha_f
             + beta.astype(jnp.float32).reshape(1, N))
    ab = jnp.concatenate([alpha_f, b_eff], axis=0)      # single tiny (2, N) operand

    # Reduction tiling (K last, "arbitrary").
    tk, D_pad = _pick_k_tiling(D, tk_max)
    if D_pad != D:
        x2d = jnp.pad(x2d, ((0, 0), (0, D_pad - D)))
        w = jnp.pad(w, ((0, D_pad - D), (0, 0)))

    # Batch tiling ("parallel"): full B when small, 256-row tiles otherwise
    # (fills the 256-row MXU pass on v6e/v7x; ragged last tile handled by cdiv).
    tb_eff = B if B <= tb else tb
    grid = (pl.cdiv(B, tb_eff), D_pad // tk)

    x_item = jnp.dtype(x2d.dtype).itemsize
    w_item = jnp.dtype(w.dtype).itemsize
    cost = pl.CostEstimate(
        flops=2 * B * D_pad * N,
        transcendentals=0,
        bytes_accessed=B * D_pad * x_item + D_pad * N * w_item + B * N * 4 + 2 * N * 4,
    )

    grid_spec = pltpu.PrefetchScalarGridSpec(
        num_scalar_prefetch=0,
        grid=grid,
        in_specs=[
            pl.BlockSpec((tb_eff, tk), lambda i, k: (i, k)),   # x tile (native dtype)
            pl.BlockSpec((tk, N), lambda i, k: (k, 0)),        # features tile
            pl.BlockSpec((2, N), lambda i, k: (0, 0)),         # packed [alpha; b_eff]
        ],
        out_specs=pl.BlockSpec((tb_eff, N), lambda i, k: (i, 0)),
        scratch_shapes=[pltpu.VMEM((tb_eff, N), jnp.float32)],
    )

    kernel = functools.partial(_cloned_readout_kernel, compute_dtype=compute_dtype)
    return pl.pallas_call(
        kernel,
        out_shape=jax.ShapeDtypeStruct((B, N), jnp.float32),
        grid_spec=grid_spec,
        compiler_params=pltpu.CompilerParams(
            dimension_semantics=("parallel", "arbitrary")),
        cost_estimate=cost,
    )(x2d, w, ab)


def cloned_readout(x_nchw, features, bias, alpha, beta, *,
                   min_pallas_bytes=1 << 20, **kw):
    """Public entry: tiny problems skip Pallas (dispatch-bound), large ones use the kernel."""
    B = x_nchw.shape[0]
    D, N = features.shape
    approx_bytes = B * D * 4 + D * N * 2 + B * N * 4
    if approx_bytes < min_pallas_bytes:
        # TODO(synk): ideally fuse the readout into the upstream feature kernel instead.
        x2d = x_nchw.reshape(B, D)
        return ((x2d @ features + bias) * alpha + beta).astype(jnp.float32)
    return cloned_readout_pallas(x_nchw, features, bias, alpha, beta, **kw)


if __name__ == "__main__":
    # Small shapes consistent with the module's forward.
    B, C, H, W = 2, 4, 16, 16
    D = C * H * W                       # 1024
    N = 32                              # number of neurons

    key = jax.random.PRNGKey(0)
    kx, kf, kb, ka, kbe = jax.random.split(key, 5)

    x = jax.random.normal(kx, (B, C, H, W), dtype=jnp.float32)

    # Source readout parameters (deterministic synthetic init).
    features = 0.05 * jax.random.normal(kf, (D, N), dtype=jnp.float32)
    bias = 0.1 * jax.random.normal(kb, (N,), dtype=jnp.float32)

    # ClonedReadout parameters: __init__ uses ones/zeros; perturb deterministically
    # so the affine transform is exercised non-trivially.
    alpha = jnp.ones((N,), jnp.float32) + 0.1 * jax.random.normal(ka, (N,), jnp.float32)
    beta = jnp.zeros((N,), jnp.float32) + 0.1 * jax.random.normal(kbe, (N,), jnp.float32)

    # Run the Pallas kernel itself (the public wrapper would route this tiny
    # problem to the fused XLA path by design).
    out = cloned_readout_pallas(x, features, bias, alpha, beta)
    out = jax.block_until_ready(out)
    assert out.shape == (B, N)

    # Reference 1: identical bf16-operand / f32-accumulate math as the kernel.
    x2d = x.reshape(B, D)
    acc_ref = jnp.dot(x2d.astype(jnp.bfloat16), features.astype(jnp.bfloat16),
                      preferred_element_type=jnp.float32)
    ref_bf16 = acc_ref * alpha + (bias * alpha + beta)
    assert jnp.allclose(out, ref_bf16, atol=1e-3, rtol=1e-3), "mismatch vs bf16-path reference"

    # Reference 2: full-f32 module semantics (looser tol: bf16 operand rounding).
    ref_f32 = (x2d @ features + bias) * alpha + beta
    assert jnp.allclose(out, ref_f32, atol=5e-2, rtol=5e-2), "mismatch vs f32 reference"

    # Gated public wrapper (XLA path at these shapes) must agree with f32 reference.
    out_gated = jax.block_until_ready(cloned_readout(x, features, bias, alpha, beta))
    assert jnp.allclose(out_gated, ref_f32, atol=1e-4, rtol=1e-4), "gated path mismatch"

    print("KERNEL_OK")
</pallas_src>

<mosaic_0001>
module attributes {stable_mosaic.version = 11 : i64} {
  func.func @_cloned_readout_kernel(%arg0: i32, %arg1: i32, %arg2: memref<2x1024xf32, #tpu.memory_space<vmem>>, %arg3: memref<1024x32xbf16, #tpu.memory_space<vmem>>, %arg4: memref<2x32xf32, #tpu.memory_space<vmem>>, %arg5: memref<2x32xf32, #tpu.memory_space<vmem>>, %arg6: memref<2x32xf32, #tpu.memory_space<vmem>>) attributes {dimension_semantics = [#tpu.dimension_semantics<parallel>, #tpu.dimension_semantics<arbitrary>], iteration_bounds = array<i64: 1, 1>, scalar_prefetch = 0 : i64, scratch_operands = 1 : i64, tpu.core_type = #tpu.core_type<tc>, window_params = [{transform_indices = @transform_0, window_bounds = array<i64: 2, 1024>}, {transform_indices = @transform_1, window_bounds = array<i64: 1024, 32>}, {pipeline_mode = #tpu.pipeline_mode<synchronous>, transform_indices = @transform_2, window_bounds = array<i64: 2, 32>}, {transform_indices = @transform_3, window_bounds = array<i64: 2, 32>}]} {
    %c0_i32 = arith.constant 0 : i32
    %0 = arith.cmpi eq, %arg1, %c0_i32 : i32
    %1 = arith.extui %0 : i1 to i32
    %c0_i32_0 = arith.constant 0 : i32
    %2 = arith.cmpi ne, %1, %c0_i32_0 : i32
    scf.if %2 {
      %cst_10 = arith.constant 0.000000e+00 : f32
      %13 = vector.broadcast %cst_10 : f32 to vector<2x32xf32>
      %c0_11 = arith.constant 0 : index
      %c0_12 = arith.constant 0 : index
      %14 = vector.load %arg6[%c0_11, %c0_12] : memref<2x32xf32, #tpu.memory_space<vmem>>, vector<2x32xf32>
      tpu.vector_store %arg6[%c0_11, %c0_12], %13 {strides = array<i32>} : memref<2x32xf32, #tpu.memory_space<vmem>>, vector<2x32xf32>,
    } else {
    }
    %c0 = arith.constant 0 : index
    %c0_1 = arith.constant 0 : index
    %3 = vector.load %arg2[%c0, %c0_1] : memref<2x1024xf32, #tpu.memory_space<vmem>>, vector<2x1024xf32>
    %4 = arith.truncf %3 : vector<2x1024xf32> to vector<2x1024xbf16>
    %c0_2 = arith.constant 0 : index
    %c0_3 = arith.constant 0 : index
    %5 = vector.load %arg6[%c0_2, %c0_3] : memref<2x32xf32, #tpu.memory_space<vmem>>, vector<2x32xf32>
    %c0_4 = arith.constant 0 : index
    %c0_5 = arith.constant 0 : index
    %6 = vector.load %arg3[%c0_4, %c0_5] : memref<1024x32xbf16, #tpu.memory_space<vmem>>, vector<1024x32xbf16>
    %cst = arith.constant dense<0.000000e+00> : vector<2x32xf32>
    %7 = tpu.matmul %4, %6, %cst {dimension_numbers = #tpu.dot_dimension_numbers<[1], [0], [0], [1], [0, 0, 1, 1], [], []>} : vector<2x1024xbf16>, vector<1024x32xbf16>, vector<2x32xf32> -> vector<2x32xf32>
    %8 = arith.addf %5, %7 : vector<2x32xf32>
    %c0_6 = arith.constant 0 : index
    %c0_7 = arith.constant 0 : index
    %9 = vector.load %arg6[%c0_6, %c0_7] : memref<2x32xf32, #tpu.memory_space<vmem>>, vector<2x32xf32>
    tpu.vector_store %arg6[%c0_6, %c0_7], %8 {strides = array<i32>} : memref<2x32xf32, #tpu.memory_space<vmem>>, vector<2x32xf32>,
    %c0_i32_8 = arith.constant 0 : i32
    %10 = arith.cmpi eq, %arg1, %c0_i32_8 : i32
    %11 = arith.extui %10 : i1 to i32
    %c0_i32_9 = arith.constant 0 : i32
    %12 = arith.cmpi ne, %11, %c0_i32_9 : i32
    scf.if %12 {
      %c0_10 = arith.constant 0 : index
      %c0_11 = arith.constant 0 : index
      %13 = vector.load %arg4[%c0_10, %c0_11] : memref<2x32xf32, #tpu.memory_space<vmem>>, vector<2x32xf32>
      %14 = vector.extract_strided_slice %13 {offsets = [0, 0], sizes = [1, 32], strides = [1, 1]} : vector<2x32xf32> to vector<1x32xf32>
      %15 = vector.extract_strided_slice %13 {offsets = [1, 0], sizes = [1, 32], strides = [1, 1]} : vector<2x32xf32> to vector<1x32xf32>
      %c0_12 = arith.constant 0 : index
      %c0_13 = arith.constant 0 : index
      %16 = vector.load %arg6[%c0_12, %c0_13] : memref<2x32xf32, #tpu.memory_space<vmem>>, vector<2x32xf32>
      %17 = vector.broadcast %14 : vector<1x32xf32> to vector<2x32xf32>
      %18 = arith.mulf %16, %17 : vector<2x32xf32>
      %19 = vector.broadcast %15 : vector<1x32xf32> to vector<2x32xf32>
      %20 = arith.addf %18, %19 : vector<2x32xf32>
      %c0_14 = arith.constant 0 : index
      %c0_15 = arith.constant 0 : index
      %21 = vector.load %arg5[%c0_14, %c0_15] : memref<2x32xf32, #tpu.memory_space<vmem>>, vector<2x32xf32>
      tpu.vector_store %arg5[%c0_14, %c0_15], %20 {strides = array<i32>} : memref<2x32xf32, #tpu.memory_space<vmem>>, vector<2x32xf32>,
    } else {
    }
    return
  }
  func.func @transform_0(%arg0: i32, %arg1: i32) -> (i32, i32) {
    %c0_i32 = arith.constant 0 : i32
    return %arg0, %arg1 : i32, i32
  }
  func.func @transform_1(%arg0: i32, %arg1: i32) -> (i32, i32) {
    %c0_i32 = arith.constant 0 : i32
    %c0_i32_0 = arith.constant 0 : i32
    return %arg1, %c0_i32 : i32, i32
  }
  func.func @transform_2(%arg0: i32, %arg1: i32) -> (i32, i32) {
    %c0_i32 = arith.constant 0 : i32
    %c0_i32_0 = arith.constant 0 : i32
    %c0_i32_1 = arith.constant 0 : i32
    return %c0_i32, %c0_i32_0 : i32, i32
  }
  func.func @transform_3(%arg0: i32, %arg1: i32) -> (i32, i32) {
    %c0_i32 = arith.constant 0 : i32
    %c0_i32_0 = arith.constant 0 : i32
    return %arg0, %c0_i32 : i32, i32
  }
}

</mosaic_0001>

<bundles_post_ra>
// kernel: tpu_custom_call.1
= control target key start
LH: loop header
LB: loop body
LE: loop exit
PB: predicated region body
PF: predicated region fallthrough
CT: control target
= control target key end

     0   :  { %s1275_s0 = inlined_call_operand.vmem [shape: f32[2,1024], index: 0, kind: input, shape index: {}]   ;;  %s1276_s1 = inlined_call_operand.vmem [shape: bf16[1024,32], index: 1, kind: input, shape index: {}]   ;;  %s1277_s2 = inlined_call_operand.vmem [shape: f32[2,32], index: 2, kind: input, shape index: {}]   ;;  %s1278_s3 = inlined_call_operand.hbm [shape: f32[2,32], index: 3, kind: output, shape index: {}]  }
   0x1   :  { %v961_v0 = vld [vmem:[%s1276_s1 + $0x38] sm:$0xff]  ;;  %v960_v4 = vld [vmem:[%s1276_s1 + $0x30] sm:$0xff]  ;;  %v959_v8 = vld [vmem:[%s1276_s1 + $0x28] sm:$0xff] }
   0x2   :  { %v969_v1 = vld [vmem:[%s1276_s1 + $0x78] sm:$0xff]  ;;  %565 = vmatpush.bf16.msra.mxu0 %v961_v0  ;;  %v968_v5 = vld [vmem:[%s1276_s1 + $0x70] sm:$0xff]  ;;  %v967_v9 = vld [vmem:[%s1276_s1 + $0x68] sm:$0xff] }
   0x3   :  { %v977_v2 = vld [vmem:[%s1276_s1 + $0xb8] sm:$0xff]  ;;  %578 = vmatpush.bf16.msra.mxu1 %v969_v1  ;;  %v976_v6 = vld [vmem:[%s1276_s1 + $0xb0] sm:$0xff]  ;;  %v975_v10 = vld [vmem:[%s1276_s1 + $0xa8] sm:$0xff] }
   0x4   :  { %v985_v3 = vld [vmem:[%s1276_s1 + $0xf8] sm:$0xff]  ;;  %591 = vmatpush.bf16.msra.mxu2 %v977_v2  ;;  %v984_v7 = vld [vmem:[%s1276_s1 + $0xf0] sm:$0xff]  ;;  %v983_v11 = vld [vmem:[%s1276_s1 + $0xe8] sm:$0xff] }
   0x5   :  { %604 = vmatpush.bf16.msra.mxu3 %v985_v3  ;;  %v958_v12 = vld [vmem:[%s1276_s1 + $0x20] sm:$0xff]  ;;  %v957_v17 = vld [vmem:[%s1276_s1 + $0x18] sm:$0xff]  ;;  %v956_v21 = vld [vmem:[%s1276_s1 + $0x10] sm:$0xff] }
   0x6   :  { %566 = vmatpush.bf16.msra.mxu0 %v960_v4  ;;  %v966_v13 = vld [vmem:[%s1276_s1 + $0x60] sm:$0xff]  ;;  %v965_v18 = vld [vmem:[%s1276_s1 + $0x58] sm:$0xff]  ;;  %v964_v22 = vld [vmem:[%s1276_s1 + $0x50] sm:$0xff] }
   0x7   :  { %579 = vmatpush.bf16.msra.mxu1 %v968_v5  ;;  %v974_v14 = vld [vmem:[%s1276_s1 + $0xa0] sm:$0xff]  ;;  %v973_v19 = vld [vmem:[%s1276_s1 + $0x98] sm:$0xff] }
   0x8   :  { %592 = vmatpush.bf16.msra.mxu2 %v976_v6  ;;  %v982_v15 = vld [vmem:[%s1276_s1 + $0xe0] sm:$0xff]  ;;  %v981_v20 = vld [vmem:[%s1276_s1 + $0xd8] sm:$0xff] }
   0x9   :  { %605 = vmatpush.bf16.msra.mxu3 %v984_v7  ;;  %v21_v16 = vld [vmem:[%s1275_s0] sm:$0xff] }
   0xa   :  { %567 = vmatpush.bf16.msra.mxu0 %v959_v8  ;;  %25 = vst [vmem:[#allocation1] ss:$4 sm:$0xff] %v21_v16 }
   0xb   :  { %580 = vmatpush.bf16.msra.mxu1 %v967_v9 }
   0xc   :  { %593 = vmatpush.bf16.msra.mxu2 %v975_v10 }
   0xd   :  { %606 = vmatpush.bf16.msra.mxu3 %v983_v11 }
   0xe   :  { %568 = vmatpush.bf16.msra.mxu0 %v958_v12 }
   0xf   :  { %581 = vmatpush.bf16.msra.mxu1 %v966_v13 }
  0x10   :  { %594 = vmatpush.bf16.msra.mxu2 %v974_v14 }
  0x11   :  { %607 = vmatpush.bf16.msra.mxu3 %v982_v15 }
  0x12   :  { %569 = vmatpush.bf16.msra.mxu0 %v957_v17 }
  0x13   :  { %582 = vmatpush.bf16.msra.mxu1 %v965_v18 }
  0x14   :  { %8 = vsyncpa [#allocation4], 0  ;;  %595 = vmatpush.bf16.msra.mxu2 %v973_v19  ;;  %v972_v23 = vld [vmem:[%s1276_s1 + $0x90] sm:$0xff]  ;;  %v955_v25 = vld [vmem:[%s1276_s1 + $0x8] sm:$0xff]  ;;  %vm19_vm0 = vcmask 254976   ;;  %s1047_s7 = smov [#allocation3]  }
  0x15   :  { %608 = vmatpush.bf16.msra.mxu3 %v981_v20  ;;  %v980_v24 = vld [vmem:[%s1276_s1 + $0xd0] sm:$0xff]  ;;  %v963_v26 = vld [vmem:[%s1276_s1 + $0x48] sm:$0xff]  ;;  %v954_v30 = vld [vmem:[%s1276_s1] sm:$0xff]  ;;  %v1046_v20 = vmov 0.0   ;;  %s687_s8 = sshll.u32 %s1047_s7, 4  ;;  %s689_s11 = sshll.u32 %s1278_s3, 4  ;;  %s688_s8 = int_to_ptr.vmem [resolvable:$true] %s687_s8  ;;  %s690_s11 = int_to_ptr.hbm [resolvable:$true] %s689_s11 }
  0x16   :  { %570 = vmatpush.bf16.msra.mxu0 %v956_v21  ;;  %v971_v27 = vld [vmem:[%s1276_s1 + $0x88] sm:$0xff]  ;;  %v962_v31 = vld [vmem:[%s1276_s1 + $0x40] sm:$0xff]  ;;  %v993_v34 = vld [vmem:[%s1276_s1 + $0x138] sm:$0xff]  ;;  %20 = vst.msk [vmem:[#allocation2] sm:$0x3] %vm19_vm0, %v1046_v20 }
  0x17   :  { %583 = vmatpush.bf16.msra.mxu1 %v964_v22  ;;  %v979_v28 = vld [vmem:[%s1276_s1 + $0xc8] sm:$0xff]  ;;  %v970_v32 = vld [vmem:[%s1276_s1 + $0x80] sm:$0xff]  ;;  %v1001_v35 = vld [vmem:[%s1276_s1 + $0x178] sm:$0xff] }
  0x18   :  { %596 = vmatpush.bf16.msra.mxu2 %v972_v23  ;;  %v22_v29 = vld [vmem:[%s1275_s0 + $0x8] sm:$0xff]  ;;  %v978_v33 = vld [vmem:[%s1276_s1 + $0xc0] sm:$0xff]  ;;  %v30_v36 = vld.sshfl [vmem:[#allocation1 + $0x10] sm:$0xff pattern:$0x73625140] }
  0x19   :  { %609 = vmatpush.bf16.msra.mxu3 %v980_v24  ;;  %27 = vst [vmem:[#allocation1 + $0x20] ss:$4 sm:$0xff] %v22_v29  ;;  %v28_v37 = vld.sshfl [vmem:[#allocation1] sm:$0xff pattern:$0x73625140]  ;;  %v1009_v40 = vld [vmem:[%s1276_s1 + $0x1b8] sm:$0xff]  ;;  %v46_v42 = vpack.c.bf16 %v30_v36, %v30_v36 }
  0x1a   :  { %571 = vmatpush.bf16.msra.mxu0 %v955_v25  ;;  %v31_v38 = vld.sshfl [vmem:[#allocation1 + $0x18] sm:$0xff pattern:$0x73625140]  ;;  %v29_v39 = vld.sshfl [vmem:[#allocation1 + $0x8] sm:$0xff pattern:$0x73625140]  ;;  %v44_v43 = vpack.c.bf16 %v28_v37, %v28_v37 }
  0x1b   :  { %584 = vmatpush.bf16.msra.mxu1 %v963_v26  ;;  %v1017_v41 = vld [vmem:[%s1276_s1 + $0x1f8] sm:$0xff]  ;;  %v47_v44 = vpack.c.bf16 %v31_v38, %v31_v38  ;;  %v45_v45 = vpack.c.bf16 %v29_v39, %v29_v39  ;;  %v992_v46 = vld [vmem:[%s1276_s1 + $0x130] sm:$0xff]  ;;  %v991_v50 = vld [vmem:[%s1276_s1 + $0x128] sm:$0xff] }
  0x1c   :  { %597 = vmatpush.bf16.msra.mxu2 %v971_v27  ;;  %v1000_v47 = vld [vmem:[%s1276_s1 + $0x170] sm:$0xff]  ;;  %v999_v51 = vld [vmem:[%s1276_s1 + $0x168] sm:$0xff]  ;;  %v990_v54 = vld [vmem:[%s1276_s1 + $0x120] sm:$0xff] }
  0x1d   :  { %610 = vmatpush.bf16.msra.mxu3 %v979_v28  ;;  %v1008_v48 = vld [vmem:[%s1276_s1 + $0x1b0] sm:$0xff]  ;;  %v1007_v52 = vld [vmem:[%s1276_s1 + $0x1a8] sm:$0xff]  ;;  %v998_v55 = vld [vmem:[%s1276_s1 + $0x160] sm:$0xff] }
  0x1e   :  { %572 = vmatpush.bf16.msra.mxu0 %v954_v30  ;;  %v1016_v49 = vld [vmem:[%s1276_s1 + $0x1f0] sm:$0xff]  ;;  %v1015_v53 = vld [vmem:[%s1276_s1 + $0x1e8] sm:$0xff]  ;;  %v1006_v56 = vld [vmem:[%s1276_s1 + $0x1a0] sm:$0xff] }
  0x1f   :  { %585 = vmatpush.bf16.msra.mxu1 %v962_v31  ;;  %v1014_v57 = vld [vmem:[%s1276_s1 + $0x1e0] sm:$0xff]  ;;  %v989_v58 = vld [vmem:[%s1276_s1 + $0x118] sm:$0xff]  ;;  %v988_v62 = vld [vmem:[%s1276_s1 + $0x110] sm:$0xff] }
  0x20   :  { %598 = vmatpush.bf16.msra.mxu2 %v970_v32  ;;  %v997_v59 = vld [vmem:[%s1276_s1 + $0x158] sm:$0xff]  ;;  %v996_v63 = vld [vmem:[%s1276_s1 + $0x150] sm:$0xff]  ;;  %v987_v2 = vld [vmem:[%s1276_s1 + $0x108] sm:$0xff] }
  0x21   :  { %611 = vmatpush.bf16.msra.mxu3 %v978_v33  ;;  %573 = vmatmul.bf16.vlgmr.msra.gmra.mxu0 %v44_v43  ;;  %v1005_v60 = vld [vmem:[%s1276_s1 + $0x198] sm:$0xff]  ;;  %v1004_v0 = vld [vmem:[%s1276_s1 + $0x190] sm:$0xff]  ;;  %v995_v3 = vld [vmem:[%s1276_s1 + $0x148] sm:$0xff] }
  0x22   :  { %617 = vmatpush.bf16.msrb.mxu0 %v993_v34  ;;  %586 = vmatmul.bf16.vlgmr.msra.gmra.mxu1 %v45_v45  ;;  %v1013_v61 = vld [vmem:[%s1276_s1 + $0x1d8] sm:$0xff]  ;;  %v1012_v1 = vld [vmem:[%s1276_s1 + $0x1d0] sm:$0xff]  ;;  %v1003_v4 = vld [vmem:[%s1276_s1 + $0x188] sm:$0xff] }
  0x23   :  { %630 = vmatpush.bf16.msrb.mxu1 %v1001_v35  ;;  %599 = vmatmul.bf16.vlgmr.msra.gmra.mxu2 %v46_v42  ;;  %v1011_v5 = vld [vmem:[%s1276_s1 + $0x1c8] sm:$0xff]  ;;  %v986_v6 = vld [vmem:[%s1276_s1 + $0x100] sm:$0xff]  ;;  %v34_v12 = vld.sshfl [vmem:[#allocation1 + $0x30] sm:$0xff pattern:$0x73625140] }
  0x24   :  { %643 = vmatpush.bf16.msrb.mxu2 %v1009_v40  ;;  %612 = vmatmul.bf16.vlgmr.msra.gmra.mxu3 %v47_v44  ;;  %v994_v7 = vld [vmem:[%s1276_s1 + $0x140] sm:$0xff]  ;;  %v33_v11 = vld.sshfl [vmem:[#allocation1 + $0x28] sm:$0xff pattern:$0x73625140]  ;;  %v50_v16 = vpack.c.bf16 %v34_v12, %v34_v12 }
  0x25   :  { %656 = vmatpush.bf16.msrb.mxu3 %v1017_v41  ;;  %v1002_v8 = vld [vmem:[%s1276_s1 + $0x180] sm:$0xff]  ;;  %v35_v13 = vld.sshfl [vmem:[#allocation1 + $0x38] sm:$0xff pattern:$0x73625140]  ;;  %v49_v15 = vpack.c.bf16 %v33_v11, %v33_v11  ;;  %v52_v39 = vld [vmem:[#allocation2] sm:$0x3] }
  0x26   :  { %618 = vmatpush.bf16.msrb.mxu0 %v992_v46  ;;  %v1010_v9 = vld [vmem:[%s1276_s1 + $0x1c0] sm:$0xff]  ;;  %v51_v17 = vpack.c.bf16 %v35_v13, %v35_v13 }
  0x27   :  { %631 = vmatpush.bf16.msrb.mxu1 %v1000_v47  ;;  %v32_v10 = vld.sshfl [vmem:[#allocation1 + $0x20] sm:$0xff pattern:$0x73625140] }
  0x28   :  { %644 = vmatpush.bf16.msrb.mxu2 %v1008_v48  ;;  %v48_v14 = vpack.c.bf16 %v32_v10, %v32_v10  ;;  %v675_v44 = vld [vmem:[%s1277_s2] sm:$0x3] }
  0x29   :  { %657 = vmatpush.bf16.msrb.mxu3 %v1016_v49  ;;  %v677_v45 = vperm.slane %v675_v44, 0  ;;  %v679_v46 = vperm.slane %v675_v44, 1 }
  0x2a   :  { %619 = vmatpush.bf16.msrb.mxu0 %v991_v50 }
  0x2b   :  { %632 = vmatpush.bf16.msrb.mxu1 %v999_v51 }
  0x2c   :  { %645 = vmatpush.bf16.msrb.mxu2 %v1007_v52 }
  0x2d   :  { %658 = vmatpush.bf16.msrb.mxu3 %v1015_v53 }
  0x2e   :  { %620 = vmatpush.bf16.msrb.mxu0 %v990_v54 }
  0x2f   :  { %633 = vmatpush.bf16.msrb.mxu1 %v998_v55 }
  0x30   :  { %646 = vmatpush.bf16.msrb.mxu2 %v1006_v56 }
  0x31   :  { %659 = vmatpush.bf16.msrb.mxu3 %v1014_v57 }
  0x32   :  { %621 = vmatpush.bf16.msrb.mxu0 %v989_v58 }
  0x33   :  { %634 = vmatpush.bf16.msrb.mxu1 %v997_v59 }
  0x34   :  { %647 = vmatpush.bf16.msrb.mxu2 %v1005_v60 }
  0x35   :  { %660 = vmatpush.bf16.msrb.mxu3 %v1013_v61 }
  0x36   :  { %622 = vmatpush.bf16.msrb.mxu0 %v988_v62 }
  0x37   :  { %635 = vmatpush.bf16.msrb.mxu1 %v996_v63 }
  0x38   :  { %648 = vmatpush.bf16.msrb.mxu2 %v1004_v0 }
  0x39   :  { %661 = vmatpush.bf16.msrb.mxu3 %v1012_v1 }
  0x3a   :  { %623 = vmatpush.bf16.msrb.mxu0 %v987_v2 }
  0x3b   :  { %636 = vmatpush.bf16.msrb.mxu1 %v995_v3 }
  0x3c   :  { %649 = vmatpush.bf16.msrb.mxu2 %v1003_v4 }
  0x3d   :  { %662 = vmatpush.bf16.msrb.mxu3 %v1011_v5 }
  0x3e   :  { %624 = vmatpush.bf16.msrb.mxu0 %v986_v6 }
  0x3f   :  { %637 = vmatpush.bf16.msrb.mxu1 %v994_v7 }
  0x40   :  { %650 = vmatpush.bf16.msrb.mxu2 %v1002_v8 }
  0x41   :  { %663 = vmatpush.bf16.msrb.mxu3 %v1010_v9  ;;  %625 = vmatmul.bf16.vlgmr.msrb.gmra.mxu0 %v48_v14 }
  0x42   :  { %638 = vmatmul.bf16.vlgmr.msrb.gmra.mxu1 %v49_v15 }
  0x43   :  { %651 = vmatmul.bf16.vlgmr.msrb.gmra.mxu2 %v50_v16 }
  0x44   :  { %664 = vmatmul.bf16.vlgmr.msrb.gmra.mxu3 %v51_v17 }
  0x9e   :  { %v574_v18 = vpop.f32.mrf.mxu0 }
  0x9f   :  { %v587_v19 = vpop.f32.mrf.mxu1 }
  0xa0   :  { %v588_v27 = vadd.f32 %v587_v19, %v574_v18 }
  0xa6   :  { %v600_v21 = vpop.f32.mrf.mxu2  ;;  %v576_v23 = vpop.f32.mrf.mxu0 }
  0xa7   :  { %v613_v22 = vpop.f32.mrf.mxu3  ;;  %v589_v24 = vpop.f32.mrf.mxu1  ;;  %v601_v28 = vadd.f32 %v600_v21, %v588_v27 }
  0xa9   :  { %v614_v29 = vadd.f32 %v613_v22, %v601_v28 }
  0xae   :  { %v602_v25 = vpop.f32.mrf.mxu2 }
  0xaf   :  { %v615_v26 = vpop.f32.mrf.mxu3 }
  0xbe   :  { %v626_v30 = vpop.f32.mrf.mxu0 }
  0xbf   :  { %v639_v31 = vpop.f32.mrf.mxu1  ;;  %v627_v32 = vadd.f32 %v626_v30, %v614_v29 }
  0xc1   :  { %v640_v33 = vadd.f32 %v639_v31, %v627_v32 }
  0xc6   :  { %v652_v34 = vpop.f32.mrf.mxu2  ;;  %v628_v37 = vpop.f32.mrf.mxu0 }
  0xc7   :  { %v665_v35 = vpop.f32.mrf.mxu3  ;;  %v653_v36 = vadd.f32 %v652_v34, %v640_v33  ;;  %v641_v38 = vpop.f32.mrf.mxu1 }
  0xc9   :  { %v666_v40 = vadd.f32 %v665_v35, %v653_v36 }
  0xcb   :  { %v669_v41 = vadd.f32 %v666_v40, %v52_v39 }
  0xcd   :  { %671 = vst.msk [vmem:[#allocation2] sm:$0x3] %vm19_vm0, %v669_v41 }
  0xce   :  { %v654_v42 = vpop.f32.mrf.mxu2 }
  0xcf   :  { %v667_v43 = vpop.f32.mrf.mxu3 }
  0xd4   :  { %v676_v47 = vld [vmem:[#allocation2] sm:$0x3] }
  0xd5   :  { %v678_v48 = vmul.f32 %v677_v45, %v676_v47 }
  0xd7   :  { %v680_v49 = vadd.f32 %v679_v46, %v678_v48 }
  0xd9   :  { %681 = vst.msk [vmem:[#allocation3] sm:$0x3] %vm19_vm0, %v680_v49 }
  0xda   :  { %692 = dma.vmem_to_hbm [thread:$0]  %s688_s8, 32, %s690_s11, [#allocation4]  }
  0xdb   :  { %1044 = dma.done.wait [#allocation4], 32  }
  0xdc   :  { %1045 = vsyncadd [#allocation4], 4294967264 }
  0xdd   :  { %697 = vsyncpa [#allocation4], 1 }

</bundles_post_ra>
